<compile_context>
chip_gen: v6e
topology: v6e:2x2x1
jax: 0.10.0
libtpu: 0.0.40
codegen_flags: <defaults>
</compile_context>

<pallas_src>
import functools

import jax
import jax.numpy as jnp
from jax.experimental import pallas as pl
from jax.experimental.pallas import tpu as pltpu


def _round_up(n, m):
    return ((n + m - 1) // m) * m


def _cdiv(a, b):
    return -(-a // b)


def _dwconv1d_kernel(x_ref, h_ref, w_ref, b_ref, o_ref, *, k_size, mult):
    # x_ref: (cb, Tt)        current time tile, input dtype
    # h_ref: (cb, H)         halo: the next H time columns (H >= K-1, lane-aligned)
    # w_ref: (mult, cb, K)   per-channel taps, f32, resident across the time axis
    # b_ref: (mult, cb, 1)   per-channel bias, f32
    # o_ref: (cb, Tt)        if mult == 1
    #        (cb, mult, Tt)  if mult  > 1
    t_tile = x_ref.shape[-1]

    # Input-dtype halo'd tile.  Both pieces are multiples of 128 lanes, so this
    # concatenation is lane-aligned vreg placement (no relayout, no f32 blow-up).
    full = jnp.concatenate([x_ref[...], h_ref[...]], axis=1)     # (cb, L)
    lanes = full.shape[-1]                                        # Tt + H

    # Tap 0 needs no shift; fold bias into the accumulator init (saves one
    # full VPU pass over the tile).  Cast to f32 only inside the tap's FMA.
    x0 = full[:, :t_tile].astype(jnp.float32)
    accs = [x0 * w_ref[m, :, 0:1] + b_ref[m] for m in range(mult)]

    for k in range(1, k_size):                                    # static unroll over taps
        # Shift by k along time = lane rotation on the XLU (idle slot here).
        # Since lanes - t_tile = H >= k, the first t_tile columns of the
        # rotated tile are exactly full[:, k:k+t_tile] (no wrap contamination),
        # and the [:, :t_tile] slice is vreg-aligned (t_tile % 128 == 0).
        sh = pltpu.roll(full, shift=lanes - k, axis=1)[:, :t_tile].astype(jnp.float32)
        for m in range(mult):                                     # input read once, M accums
            accs[m] = accs[m] + sh * w_ref[m, :, k:k + 1]

    if mult == 1:
        o_ref[...] = accs[0].astype(o_ref.dtype)
    else:
        for m in range(mult):
            o_ref[:, m, :] = accs[m].astype(o_ref.dtype)


def depthwise_conv1d(x, weight, bias, padding):
    """Matches nn.Conv1d(Cin, Cout, K, groups=Cin)(F.pad(x, padding)).

    x:       (B, Cin, T)
    weight:  (Cout, K)     == torch conv.weight[:, 0, :]
    bias:    (Cout,)       == torch conv.bias
    padding: (left, right) F.pad on the time axis (non-negative)
    returns: (B, Cout, T + left + right - K + 1)
    """
    B, c_in, T = x.shape
    c_out, K = weight.shape
    assert c_out % c_in == 0, "groups=chan_in requires chan_out % chan_in == 0"
    mult = c_out // c_in
    left, right = padding
    assert left >= 0 and right >= 0
    t_pad = T + left + right
    t_out = t_pad - K + 1
    assert t_out >= 1, "kernel longer than padded input"

    # ---- channel blocking (sublane axis; no 128-lane channel padding) ----
    c8 = _round_up(c_in, 8)
    cb = min(c8, 128)                       # channel rows per block
    c_in_p = _round_up(c8, cb)              # padded input-channel count
    nc = c_in_p // cb

    # ---- time tiling (lane axis) ----
    halo = _round_up(max(K - 1, 1), 128)    # lane-aligned halo width (>= K-1)
    in_isz = jnp.dtype(x.dtype).itemsize
    # VMEM rows occupied by one output block (a (cb, mult, Tt) block pads the
    # mult sublane dim of each (8,128) tile).
    out_rows = cb * (_round_up(mult, 8) if mult > 1 else 1)
    # bytes per output column of one grid step:
    #   3x input dtype  : double-buffered input block + in-kernel halo'd copy
    #   2x output block : double buffering
    #   (mult+1) x f32  : accumulators + one shifted tap temporary
    per_col = 3 * cb * in_isz + 2 * out_rows * in_isz + (mult + 1) * cb * 4
    budget = 8 * 1024 * 1024                # well under v5e's 16 MiB default scoped VMEM
    t_tile = budget // per_col
    t_tile = min(t_tile, 16384, max(128, 131072 // cb))   # bound unrolled vreg count
    t_tile = max(halo, (t_tile // halo) * halo)            # multiple of halo (hence of 128)
    t_tile = min(t_tile, _round_up(t_out, halo))
    if B * nc == 1 and t_out > halo:
        # expose >= 2 grid steps so v7x megacore can shard the grid
        t_tile = min(t_tile, max(halo, _round_up(_cdiv(t_out, 2), halo)))
    nt = _cdiv(t_out, t_tile)
    t_total = nt * t_tile + halo
    r = t_tile // halo                      # halo blocks per time tile

    # Single pad pass on the input: conv padding + tile rounding (time) and
    # sublane rounding (channels).  No transpose, no repeat.
    xp = jnp.pad(x, ((0, 0), (0, c_in_p - c_in), (left, t_total - T - left)))

    # Tiny parameter reshapes (Cout*K elements, negligible):
    #   weight row co = ci*mult + m  ->  w3[m, ci, :]   (grouping matches torch)
    w3 = jnp.transpose(weight.astype(jnp.float32).reshape(c_in, mult, K), (1, 0, 2))
    w3 = jnp.pad(w3, ((0, 0), (0, c_in_p - c_in), (0, 0)))
    b3 = jnp.transpose(bias.astype(jnp.float32).reshape(c_in, mult), (1, 0))[:, :, None]
    b3 = jnp.pad(b3, ((0, 0), (0, c_in_p - c_in), (0, 0)))

    in_specs = [
        pl.BlockSpec((None, cb, t_tile), lambda b, c, t: (b, c, t)),
        pl.BlockSpec((None, cb, halo), lambda b, c, t, r=r: (b, c, (t + 1) * r)),
        pl.BlockSpec((mult, cb, K), lambda b, c, t: (0, c, 0)),
        pl.BlockSpec((mult, cb, 1), lambda b, c, t: (0, c, 0)),
    ]
    if mult == 1:
        out_shape = jax.ShapeDtypeStruct((B, c_in_p, nt * t_tile), x.dtype)
        out_specs = pl.BlockSpec((None, cb, t_tile), lambda b, c, t: (b, c, t))
    else:
        out_shape = jax.ShapeDtypeStruct((B, c_in_p, mult, nt * t_tile), x.dtype)
        out_specs = pl.BlockSpec((None, cb, mult, t_tile), lambda b, c, t: (b, c, 0, t))

    out = pl.pallas_call(
        functools.partial(_dwconv1d_kernel, k_size=K, mult=mult),
        out_shape=out_shape,
        grid=(B, nc, nt),
        in_specs=in_specs,
        out_specs=out_specs,
        compiler_params=pltpu.CompilerParams(
            dimension_semantics=("parallel", "parallel", "parallel"),
            vmem_limit_bytes=32 * 1024 * 1024,
        ),
    )(xp, xp, w3, b3)

    if mult > 1:
        # (B, Cin_p, mult, T') -> (B, Cin_p*mult, T'): adjacent-dim merge, no transpose.
        out = out.reshape(B, c_in_p * mult, nt * t_tile)
    return out[:, :c_out, :t_out]           # drop channel/time rounding padding


def _reference(x, weight, bias, padding):
    """Pure-JAX reference identical to conv1d(F.pad(x, padding), groups=Cin)."""
    c_out, K = weight.shape
    c_in = x.shape[1]
    mult = c_out // c_in
    left, right = padding
    xp = jnp.pad(x, ((0, 0), (0, 0), (left, right)))
    xr = jnp.repeat(xp, mult, axis=1) if mult > 1 else xp
    t_out = xp.shape[-1] - K + 1
    y = bias[None, :, None]
    for k in range(K):
        y = y + weight[:, k][None, :, None] * xr[:, :, k:k + t_out]
    return y


if __name__ == "__main__":
    key = jax.random.PRNGKey(0)

    # Case 1: torchfcpe-style usage — chan_out == chan_in, "same" padding.
    B, c_in, T, K = 2, 4, 16, 3
    c_out = c_in
    padding = (K // 2, K // 2)
    k1, k2, k3, k4 = jax.random.split(key, 4)
    x = jax.random.normal(k1, (B, c_in, T), dtype=jnp.float32)
    w = 0.2 * jax.random.normal(k2, (c_out, K), dtype=jnp.float32)
    b = 0.1 * jax.random.normal(k3, (c_out,), dtype=jnp.float32)

    y = jax.block_until_ready(depthwise_conv1d(x, w, b, padding))
    y_ref = _reference(x, w, b, padding)
    assert y.shape == (B, c_out, T), y.shape
    assert jnp.allclose(y, y_ref, atol=1e-5, rtol=1e-5), float(
        jnp.max(jnp.abs(y - y_ref))
    )

    # Case 2: depth multiplier > 1, even kernel, asymmetric padding.
    c_in2, c_out2, K2, T2 = 3, 6, 4, 10
    padding2 = (2, 1)
    x2 = jax.random.normal(k4, (B, c_in2, T2), dtype=jnp.float32)
    w2 = 0.2 * jax.random.normal(k2, (c_out2, K2), dtype=jnp.float32)
    b2 = 0.1 * jax.random.normal(k3, (c_out2,), dtype=jnp.float32)

    y2 = jax.block_until_ready(depthwise_conv1d(x2, w2, b2, padding2))
    y2_ref = _reference(x2, w2, b2, padding2)
    assert y2.shape == y2_ref.shape, (y2.shape, y2_ref.shape)
    assert jnp.allclose(y2, y2_ref, atol=1e-5, rtol=1e-5), float(
        jnp.max(jnp.abs(y2 - y2_ref))
    )

    print("KERNEL_OK")
</pallas_src>

<mosaic_0001>
module attributes {stable_mosaic.version = 11 : i64} {
  func.func @_dwconv1d_kernel(%arg0: i32, %arg1: i32, %arg2: i32, %arg3: memref<1x8x128xf32, #tpu.memory_space<vmem>>, %arg4: memref<1x8x128xf32, #tpu.memory_space<vmem>>, %arg5: memref<1x8x3xf32, #tpu.memory_space<vmem>>, %arg6: memref<1x8x1xf32, #tpu.memory_space<vmem>>, %arg7: memref<1x8x128xf32, #tpu.memory_space<vmem>>) attributes {dimension_semantics = [#tpu.dimension_semantics<parallel>, #tpu.dimension_semantics<parallel>, #tpu.dimension_semantics<parallel>], iteration_bounds = array<i64: 2, 1, 1>, scalar_prefetch = 0 : i64, scratch_operands = 0 : i64, tpu.core_type = #tpu.core_type<tc>, window_params = [{transform_indices = @transform_0, window_bounds = array<i64: 1, 8, 128>}, {transform_indices = @transform_1, window_bounds = array<i64: 1, 8, 128>}, {transform_indices = @transform_2, window_bounds = array<i64: 1, 8, 3>}, {transform_indices = @transform_3, window_bounds = array<i64: 1, 8, 1>}, {transform_indices = @transform_4, window_bounds = array<i64: 1, 8, 128>}]} {
    %c0 = arith.constant 0 : index
    %c0_0 = arith.constant 0 : index
    %c0_1 = arith.constant 0 : index
    %0 = vector.load %arg3[%c0, %c0_0, %c0_1] : memref<1x8x128xf32, #tpu.memory_space<vmem>>, vector<1x8x128xf32>
    %1 = vector.shape_cast %0 : vector<1x8x128xf32> to vector<8x128xf32>
    %c0_2 = arith.constant 0 : index
    %c0_3 = arith.constant 0 : index
    %c0_4 = arith.constant 0 : index
    %2 = vector.load %arg4[%c0_2, %c0_3, %c0_4] : memref<1x8x128xf32, #tpu.memory_space<vmem>>, vector<1x8x128xf32>
    %3 = vector.shape_cast %2 : vector<1x8x128xf32> to vector<8x128xf32>
    %4 = tpu.concatenate %1, %3 in 1 : vector<8x128xf32>, vector<8x128xf32> -> vector<8x256xf32>
    %5 = vector.extract_strided_slice %4 {offsets = [0, 0], sizes = [8, 128], strides = [1, 1]} : vector<8x256xf32> to vector<8x128xf32>
    %c0_5 = arith.constant 0 : index
    %c0_6 = arith.constant 0 : index
    %c0_7 = arith.constant 0 : index
    %6 = vector.load %arg5[%c0_5, %c0_6, %c0_7] : memref<1x8x3xf32, #tpu.memory_space<vmem>>, vector<1x8x1xf32>
    %7 = vector.shape_cast %6 : vector<1x8x1xf32> to vector<8x1xf32>
    %8 = vector.broadcast %7 : vector<8x1xf32> to vector<8x128xf32>
    %9 = arith.mulf %5, %8 : vector<8x128xf32>
    %c0_8 = arith.constant 0 : index
    %c0_9 = arith.constant 0 : index
    %c0_10 = arith.constant 0 : index
    %10 = vector.load %arg6[%c0_8, %c0_9, %c0_10] : memref<1x8x1xf32, #tpu.memory_space<vmem>>, vector<1x8x1xf32>
    %11 = vector.shape_cast %10 : vector<1x8x1xf32> to vector<8x1xf32>
    %12 = vector.broadcast %11 : vector<8x1xf32> to vector<8x128xf32>
    %13 = arith.addf %9, %12 : vector<8x128xf32>
    %c255_i32 = arith.constant 255 : i32
    %14 = tpu.dynamic_rotate %4 by %c255_i32 dim 1 : vector<8x256xf32>, i32 -> vector<8x256xf32>
    %15 = vector.extract_strided_slice %14 {offsets = [0, 0], sizes = [8, 128], strides = [1, 1]} : vector<8x256xf32> to vector<8x128xf32>
    %c0_11 = arith.constant 0 : index
    %c0_12 = arith.constant 0 : index
    %c1 = arith.constant 1 : index
    %16 = vector.load %arg5[%c0_11, %c0_12, %c1] : memref<1x8x3xf32, #tpu.memory_space<vmem>>, vector<1x8x1xf32>
    %17 = vector.shape_cast %16 : vector<1x8x1xf32> to vector<8x1xf32>
    %18 = vector.broadcast %17 : vector<8x1xf32> to vector<8x128xf32>
    %19 = arith.mulf %15, %18 : vector<8x128xf32>
    %20 = arith.addf %13, %19 : vector<8x128xf32>
    %c254_i32 = arith.constant 254 : i32
    %21 = tpu.dynamic_rotate %4 by %c254_i32 dim 1 : vector<8x256xf32>, i32 -> vector<8x256xf32>
    %22 = vector.extract_strided_slice %21 {offsets = [0, 0], sizes = [8, 128], strides = [1, 1]} : vector<8x256xf32> to vector<8x128xf32>
    %c0_13 = arith.constant 0 : index
    %c0_14 = arith.constant 0 : index
    %c2 = arith.constant 2 : index
    %23 = vector.load %arg5[%c0_13, %c0_14, %c2] : memref<1x8x3xf32, #tpu.memory_space<vmem>>, vector<1x8x1xf32>
    %24 = vector.shape_cast %23 : vector<1x8x1xf32> to vector<8x1xf32>
    %25 = vector.broadcast %24 : vector<8x1xf32> to vector<8x128xf32>
    %26 = arith.mulf %22, %25 : vector<8x128xf32>
    %27 = arith.addf %20, %26 : vector<8x128xf32>
    %c0_15 = arith.constant 0 : index
    %c0_16 = arith.constant 0 : index
    %c0_17 = arith.constant 0 : index
    %28 = vector.load %arg7[%c0_15, %c0_16, %c0_17] : memref<1x8x128xf32, #tpu.memory_space<vmem>>, vector<1x8x128xf32>
    %29 = vector.shape_cast %28 : vector<1x8x128xf32> to vector<8x128xf32>
    %30 = vector.shape_cast %27 : vector<8x128xf32> to vector<1x8x128xf32>
    tpu.vector_store %arg7[%c0_15, %c0_16, %c0_17], %30 {strides = array<i32>} : memref<1x8x128xf32, #tpu.memory_space<vmem>>, vector<1x8x128xf32>,
    return
  }
  func.func @transform_0(%arg0: i32, %arg1: i32, %arg2: i32) -> (i32, i32, i32) {
    %c0_i32 = arith.constant 0 : i32
    return %arg0, %arg1, %arg2 : i32, i32, i32
  }
  func.func @transform_1(%arg0: i32, %arg1: i32, %arg2: i32) -> (i32, i32, i32) {
    %c1_i32 = arith.constant 1 : i32
    %0 = arith.addi %arg2, %c1_i32 : i32
    %c1_i32_0 = arith.constant 1 : i32
    %1 = arith.muli %0, %c1_i32_0 : i32
    %c0_i32 = arith.constant 0 : i32
    return %arg0, %arg1, %1 : i32, i32, i32
  }
  func.func @transform_2(%arg0: i32, %arg1: i32, %arg2: i32) -> (i32, i32, i32) {
    %c0_i32 = arith.constant 0 : i32
    %c0_i32_0 = arith.constant 0 : i32
    %c0_i32_1 = arith.constant 0 : i32
    return %c0_i32, %arg1, %c0_i32_0 : i32, i32, i32
  }
  func.func @transform_3(%arg0: i32, %arg1: i32, %arg2: i32) -> (i32, i32, i32) {
    %c0_i32 = arith.constant 0 : i32
    %c0_i32_0 = arith.constant 0 : i32
    %c0_i32_1 = arith.constant 0 : i32
    return %c0_i32, %arg1, %c0_i32_0 : i32, i32, i32
  }
  func.func @transform_4(%arg0: i32, %arg1: i32, %arg2: i32) -> (i32, i32, i32) {
    %c0_i32 = arith.constant 0 : i32
    return %arg0, %arg1, %arg2 : i32, i32, i32
  }
}

</mosaic_0001>

<bundles_post_ra>
// kernel: tpu_custom_call.1
= control target key start
LH: loop header
LB: loop body
LE: loop exit
PB: predicated region body
PF: predicated region fallthrough
CT: control target
= control target key end

     0   :  { %s977_s0 = inlined_call_operand.hbm [shape: f32[2,8,256], index: 0, kind: input, shape index: {}]   ;;  %s978_s1 = inlined_call_operand.hbm [shape: f32[2,8,256], index: 1, kind: input, shape index: {}]   ;;  %s979_s2 = inlined_call_operand.vmem [shape: f32[1,8,3], index: 2, kind: input, shape index: {}]   ;;  %s980_s3 = inlined_call_operand.vmem [shape: f32[1,8,1], index: 3, kind: input, shape index: {}]   ;;  %s981_s4 = inlined_call_operand.hbm [shape: f32[2,8,128], index: 4, kind: output, shape index: {}]  }
   0x1   :  { %982 = sst [smem:[#allocation11_spill]] %s977_s0 }
   0x2   :  { %9 = vsyncpa [#allocation3], 0 }
   0x3   :  { %11 = vsyncpa [#allocation3 + $0x1], 0 }
   0x4   :  { %12 = vsyncpa [#allocation6], 0 }
   0x5   :  { %14 = vsyncpa [#allocation6 + $0x1], 0 }
   0x6   :  { %15 = vsyncpa [#allocation4], 0 }
   0x7   :  { %17 = vsyncpa [#allocation4 + $0x1], 0  ;;  %s805_s15 = smov 0   ;;  %s807_s16 = smov 0  }
   0x8   :  { %s809_s17 = smov 0   ;;  %s811_s18 = smov 0  }
   0x9   :  { %s813_s19 = smov 0   ;;  %s815_s20 = smov 0  }
   0xa LB: > { %s531_s21 = sadd.s32 4294967295, %s770_s20   ;;  %s532_s22 = sadd.s32 4294967294, %s770_s20   ;;  %s770_s20 = sphi %s815_s20, %s23_s20   ;;  %s766_s19 = sphi %s813_s19, %s995_s19   ;;  %s762_s18 = sphi %s811_s18, %s994_s18   ;;  %s758_s17 = sphi %s809_s17, %s993_s17   ;;  %s754_s16 = sphi %s807_s16, %s992_s16   ;;  %s750_s15 = sphi %s805_s15, %s991_s15  }
   0xb   : > { %s42_s23 = sadd.s32 1, %s766_s19  ;;  %s53_s24 = sadd.s32 1, %s758_s17 }
   0xc   : > { %p44_p0 = scmp.ge.s32.totalorder %s42_s23, 2  ;;  %p60_p1 = scmp.ne.s32.totalorder %s758_s17, %s754_s16 }
   0xd   : > { %p61_p2 = scmp.eq.s32.totalorder %s770_s20, 0  ;;  %p66_p3 = scmp.ne.s32.totalorder %s754_s16, %s750_s15 }
   0xe   : > { %s997_s23 = smov (%p44_p0, %s42_s23), 0  ;;  %p67_p5 = scmp.eq.s32.totalorder %s531_s21, 0 }
   0xf   : > { %p846_p4 = por %p61_p2, %p60_p1  ;;  %s46_s26 = ssub.s32 %s766_s19, %s997_s23 }
  0x10   : > { %p178_p6 = scmp.eq.s32.totalorder %s531_s21, 1  ;;  %p51_p7 = scmp.eq.s32.totalorder %s46_s26, 0 }
  0x11   : > { %p852_p8 = por %p67_p5, %p66_p3  ;;  %p184_p10 = scmp.eq.s32.totalorder %s532_s22, 1 }
  0x12   : > { %p856_p9 = por %p178_p6, %p60_p1  ;;  %p570_p13 = scmp.lt.s32.totalorder %s770_s20, 2 }
  0x13   : > { %s861_s29 = scalar_select %p51_p7, %s758_s17, %s53_s24  }
  0x14   : > { %p863_p11 = por %p184_p10, %p66_p3  ;;  %s870_s5 = sand.u32 1, %s758_s17  }
  0x15   : > { %s537_s6 = sshll.u32 %s870_s5, 3  ;;  %s551_s7 = sshll.u32 %s766_s19, 8 }
  0x16   : > { %s987_s0 = sld [smem:[#allocation11_spill]]  ;;  %s222_s11 = scalar_lea.vmem [#allocation2], %s537_s6 }
  0x17   : > { %s233_s12 = sshll.u32 %s222_s11, 4  ;;  %p879_p0 = pnand %p570_p13, %p846_p4  ;;  %s234_s12 = int_to_ptr.vmem [resolvable:$true] %s233_s12 }
  0x18   : > { %p543_p1 = scmp.ge.s32.totalorder %s770_s20, 1  ;;  %p261_p2 = scmp.lt.s32.totalorder %s770_s20, 3 }
  0x19   : > { %s219_s14 = scalar_lea.sflag [#allocation3], %s870_s5  ;;  %p631_p3 = pneg %p879_p0 }
  0x1a   : > { %s642_s21 = scalar_lea.vmem %s234_s12, 128  ;;  %s772_s22 = smov [#allocation2]  }
  0x1b   : > { %p643_p5 = scmp.ne.s32.totalorder %s234_s12, %s642_s21  ;;  %s647_s24 = sshll.u32 %s772_s22, 4  ;;  %s648_s24 = int_to_ptr.vmem [resolvable:$false] %s647_s24 }
  0x1c   : > { %s231_s10 = scalar_lea.hbm %s987_s0, %s551_s7  ;;  %s649_s25 = scalar_lea.vmem %s648_s24, 256 }
  0x1d   : > { %p645_p6 = pnand %p643_p5, %p631_p3  ;;  %p650_p4 = scmp.lt.s32.totalorder %s234_s12, %s648_s24 }
  0x1e   : > { %p651_p10 = scmp.lt.s32.totalorder %s649_s25, %s642_s21 }
  0x1f   : > { %p646_p7 = pneg %p645_p6 }
  0x20   : > { %p652_p13 = por %p651_p10, %p650_p4 }
  0x22   : > { %p653_p12 = pnand %p652_p13, %p646_p7 }
  0x24   : > { %656 = shalt.err (!%p653_p12)
}
  0x25   : > { %562 = dma.hbm_to_vmem [thread:$0]  (!%p879_p0), %s231_s10, 128, %s234_s12, %s219_s14  }
  0x26   : > { %p897_p5 = pnand %p543_p1, %p261_p2  ;;  %s434_s11 = scalar_lea.hbm %s978_s1, %s551_s7 }
  0x27   : > { %s244_s21 = scalar_lea.vmem [#allocation5], %s537_s6  ;;  %s435_s24 = scalar_lea.hbm %s434_s11, 128 }
  0x28   : > { %s256_s22 = sshll.u32 %s244_s21, 4  ;;  %s241_s25 = scalar_lea.sflag [#allocation6], %s870_s5  ;;  %s257_s22 = int_to_ptr.vmem [resolvable:$true] %s256_s22 }
  0x29   : > { %s670_s0 = scalar_lea.vmem %s257_s22, 128  ;;  %s773_s10 = smov [#allocation5]  }
  0x2a   : > { %p671_p12 = scmp.ne.s32.totalorder %s257_s22, %s670_s0  ;;  %s675_s12 = sshll.u32 %s773_s10, 4  ;;  %s676_s12 = int_to_ptr.vmem [resolvable:$false] %s675_s12 }
  0x2b   : > { %s677_s14 = scalar_lea.vmem %s676_s12, 256  ;;  %p678_p1 = scmp.lt.s32.totalorder %s257_s22, %s676_s12 }
  0x2c   : > { %p673_p6 = pnand %p671_p12, %p631_p3  ;;  %p679_p2 = scmp.lt.s32.totalorder %s677_s14, %s670_s0 }
  0x2e   : > { %p674_p7 = pneg %p673_p6  ;;  %p680_p4 = por %p679_p2, %p678_p1 }
  0x30   : > { %p681_p10 = pnand %p680_p4, %p674_p7 }
  0x32   : > { %684 = shalt.err (!%p681_p10)
}
  0x33   : > { %565 = dma.hbm_to_vmem [thread:$0]  (!%p879_p0), %s435_s24, 128, %s257_s22, %s241_s25  }
  0x34   : > { %265 = sbr.rel (%p897_p5) target bundleno = 217 (0xd9), region = 36  ;;  %s913_s5 = sand.u32 (!%p897_p5), 1, %s754_s16  }
  0x35   : > { %s916_s6 = sshll.u32 (!%p897_p5), %s913_s5, 3  ;;  %s268_s7 = scalar_lea.sflag (!%p897_p5), [#allocation3], %s913_s5 }
  0x36   : > { %s271_s0 = scalar_lea.vmem (!%p897_p5), [#allocation2], %s916_s6 }
  0x39   : > { %737 = dma.done.wait (%p852_p8), %s268_s7, 128  }
  0x3a   : > { %739 = vsyncadd (%p852_p8), %s268_s7, 4294967168  ;;  %s277_s13 = scalar_lea.sflag [#allocation6], %s913_s5  ;;  %s280_s26 = scalar_lea.vmem [#allocation5], %s916_s6 }
  0x3b   : > { %741 = dma.done.wait (%p852_p8), %s277_s13, 128  }
  0x3c   : > { %743 = vsyncadd (%p852_p8), %s277_s13, 4294967168  ;;  %v774_v0 = vmov 1   ;;  %v775_v1 = vmov 0   ;;  %v329_v2 = vld [vmem:[%s979_s2] sm:$0xff]  ;;  %v776_v4 = vmov 2   ;;  %v328_v6 = vld [vmem:[%s280_s26] sm:$0xff]  ;;  %v347_v7 = vlaneseq }
  0x3d   : > { %626 = vset.pattern.permute.xlu1 %v774_v0  ;;  %625 = vset.pattern.permute.xlu0 %v775_v1  ;;  %v336_v3 = vld [vmem:[%s980_s3] sm:$0xff]  ;;  %s777_s27 = smov 127   ;;  %s778_s22 = smov 126  }
  0x3e   : > { %352 = vperm.xlu1 %626, %v329_v2   ;;  %332 = vperm.xlu0 %625, %v329_v2   ;;  %v327_v5 = vld [vmem:[%s271_s0] sm:$0xff]  ;;  %v348_v10 = vand.u32 127, %v347_v7  ;;  %s548_s24 = sshll.u32 %s762_s18, 7  ;;  %s317_s25 = scalar_lea.vmem [#allocation7], %s916_s6 }
  0x3f   : > { %s386_s10 = sshll.u32 %s317_s25, 4  ;;  %s384_s7 = scalar_lea.hbm %s981_s4, %s548_s24  ;;  %s387_s10 = int_to_ptr.vmem [resolvable:$true] %s386_s10 }
  0x40   : > { %vm349_vm0 = vcmp.lt.s32.totalorder %v348_v10, 127  ;;  %vm361_vm1 = vcmp.lt.s32.totalorder %v348_v10, 126  ;;  %s371_s0 = scalar_lea.sflag [#allocation4], %s913_s5  ;;  %s686_s13 = scalar_lea.vmem %s387_s10, 128 }
  0x41   : > { %p687_p8 = scmp.ne.s32.totalorder %s387_s10, %s686_s13  ;;  %s779_s26 = smov [#allocation7]  }
  0x42   : > { %627 = vset.pattern.permute.xlu1 %v776_v4  ;;  %339 = vperm.xlu0 %625, %v336_v3   ;;  %s690_s8 = sshll.u32 %s779_s26, 4  ;;  %s691_s8 = int_to_ptr.vmem [resolvable:$false] %s690_s8 }
  0x43   : > { %364 = vperm.xlu1 %627, %v329_v2   ;;  %p688_p0 = pnand %p687_p8, %p856_p9  ;;  %s692_s18 = scalar_lea.vmem %s691_s8, 256 }
  0x44   : > { %p693_p13 = scmp.lt.s32.totalorder %s387_s10, %s691_s8  ;;  %p694_p5 = scmp.lt.s32.totalorder %s692_s18, %s686_s13 }
  0x45   : > { %p689_p3 = pneg %p688_p0 }
  0x46   : > { %343 = vrot.lane.b32.xlu0 %v327_v5, %s777_s27  ;;  %p695_p12 = por %p694_p5, %p693_p13 }
  0x47   : > { %345 = vrot.lane.b32.xlu1 %v328_v6, %s777_s27  ;;  %628 = vset.pattern.permute.xlu0 %v776_v4 }
  0x48   : > { %p696_p6 = pnand %p695_p12, %p689_p3 }
  0x4a   : > { %357 = vrot.lane.b32.xlu0 %v327_v5, %s778_s22 }
  0x4b   : > { %359 = vrot.lane.b32.xlu1 %v328_v6, %s778_s22 }
  0xb9   : > { %v353_v8 = vpop.permute.xlu1 %352  ;;  %v333_v9 = vpop.permute.xlu0 %332 }
  0xba   : > { %v335_v14 = vmul.f32 %v333_v9, %v327_v5 }
  0xbd   : > { %v340_v11 = vpop.permute.xlu0 %339 }
  0xbe   : > { %v365_v12 = vpop.permute.xlu1 %364  ;;  %v342_v19 = vadd.f32 %v340_v11, %v335_v14 }
  0xc1   : > { %v344_v13 = vpop.permute.xlu0 %343 }
  0xc2   : > { %v346_v15 = vpop.permute.xlu1 %345 }
  0xc3   : > { %v350_v16 = vsel %vm349_vm0, %v344_v13, %v346_v15 }
  0xc4   : > { %v355_v17 = vmul.f32 %v353_v8, %v350_v16 }
  0xc5   : > { %v358_v18 = vpop.permute.xlu0 %357 }
  0xc6   : > { %v360_v20 = vpop.permute.xlu1 %359  ;;  %v356_v22 = vadd.f32 %v355_v17, %v342_v19 }
  0xc7   : > { %v362_v21 = vsel %vm361_vm1, %v358_v18, %v360_v20 }
  0xc8   : > { %v367_v23 = vmul.f32 %v365_v12, %v362_v21 }
  0xca   : > { %v368_v24 = vadd.f32 %v367_v23, %v356_v22 }
  0xcc   : > { %369 = vst [vmem:[%s317_s25] sm:$0xff] %v368_v24 }
  0xcd   : > { %699 = shalt.err (!%p696_p6)
}
  0xce   : > { %s700_s6 = scalar_lea.hbm %s384_s7, 128  ;;  %s704_s11 = scalar_lea.hbm %s981_s4, 256 }
  0xcf   : > { %p701_p7 = scmp.ne.s32.totalorder %s384_s7, %s700_s6  ;;  %p705_p4 = scmp.lt.s32.totalorder %s384_s7, %s981_s4 }
  0xd0   : > { %p706_p10 = scmp.lt.s32.totalorder %s704_s11, %s700_s6 }
  0xd1   : > { %p702_p1 = pnand %p701_p7, %p856_p9 }
  0xd2   : > { %p707_p8 = por %p706_p10, %p705_p4 }
  0xd3   : > { %p703_p2 = pneg %p702_p1 }
  0xd5   : > { %p708_p0 = pnand %p707_p8, %p703_p2 }
  0xd7   : > { %711 = shalt.err (!%p708_p0)
}
  0xd8   : > { %557 = dma.vmem_to_hbm [thread:$0]  (%p856_p9), %s387_s10, 128, %s384_s7, %s371_s0  }
  0xd9 PF: > { %s398_s22 = sand.u32 1, %s750_s15   ;;  %p990_p3 = scmp.ge.s32.totalorder %s770_s20, 2 }
  0xda   : > { %s399_s24 = scalar_lea.sflag [#allocation4], %s398_s22 }
  0xdb   : > { %p567_p13 = pnand %p990_p3, %p863_p11 }
  0xdd   : > { %p568_p5 = pneg %p567_p13 }
  0xdf   : > { %745 = dma.done.wait (%p568_p5), %s399_s24, 128  }
  0xe0   : > { %747 = vsyncadd (%p568_p5), %s399_s24, 4294967168  ;;  %s23_s20 = sadd.s32 1, %s770_s20   ;;  %s991_s15 = smov %s754_s16 }
  0xe1   : > { %p20_p12 = scmp.ge.s32.totalorder %s23_s20, 4   ;;  %s992_s16 = smov %s758_s17 }
  0xe2   : > { %s993_s17 = smov %s861_s29  ;;  %s994_s18 = smov %s766_s19 }
  0xe3   : > { %s995_s19 = smov %s997_s23  ;;  %22 = sbr.rel (!%p20_p12) target bundleno = 10 (0xa), region = 100 }
  0xe8   :  { %404 = vsyncpa [#allocation3], 1 }
  0xe9   :  { %406 = vsyncpa [#allocation3 + $0x1], 1 }
  0xea   :  { %407 = vsyncpa [#allocation6], 1 }
  0xeb   :  { %409 = vsyncpa [#allocation6 + $0x1], 1 }
  0xec   :  { %410 = vsyncpa [#allocation4], 1 }
  0xed   :  { %412 = vsyncpa [#allocation4 + $0x1], 1 }

</bundles_post_ra>
